<compile_context>
chip_gen: v5e
topology: v5e:2x2
jax: 0.10.0
libtpu: 0.0.40
codegen_flags: <defaults>
</compile_context>

<pallas_src>
import functools

import jax
import jax.numpy as jnp
from jax.experimental import pallas as pl
from jax.experimental.pallas import tpu as pltpu


def _round_up(a, b):
    return (a + b - 1) // b * b


def _vmem_capacity_bytes():
    """Physical VMEM per core; conservative fallback (v7x = 64 MiB) if query fails."""
    try:
        return int(pltpu.get_tpu_info().vmem_capacity_bytes)
    except Exception:
        return 64 * 1024 * 1024


def _gelu(x, approximate):
    if approximate:
        # tanh formulation -> EUP slot (otherwise idle here); useful on v5e.
        return jax.nn.gelu(x, approximate=True)
    # PyTorch nn.GELU() default = exact erf formulation.
    return 0.5 * x * (1.0 + jax.lax.erf(x * (1.0 / jnp.sqrt(2.0))))


def embed_head_kernel(x_ref, wp_ref, wf_ref, vecs_ref, o_ref, *, eps, approximate_gelu):
    # x_ref:    (TM, E)   row tile of the input (last grid block may be ragged)
    # wp_ref:   (E, P)    projection weight (resident, single-buffered)
    # wf_ref:   (P, P)    fc weight         (resident, single-buffered)
    # vecs_ref: (4, P)    rows = [b_proj, b_fc, gamma, beta]
    # o_ref:    (TM, P)   row tile of the output
    b_proj = vecs_ref[0:1, :].astype(jnp.float32)
    b_fc = vecs_ref[1:2, :].astype(jnp.float32)
    gamma = vecs_ref[2:3, :].astype(jnp.float32)
    beta = vecs_ref[3:4, :].astype(jnp.float32)

    # projection = x @ Wp + bp  (native-dtype MXU inputs, f32 accumulation)
    projected = jnp.dot(x_ref[...], wp_ref[...],
                        preferred_element_type=jnp.float32) + b_proj

    # GELU
    h = _gelu(projected, approximate_gelu)

    # fc = gelu(projected) @ Wf + bf
    h = jnp.dot(h.astype(wf_ref.dtype), wf_ref[...],
                preferred_element_type=jnp.float32) + b_fc

    # dropout: identity in eval mode (training mode rejected in the wrapper).
    # TODO(synk): training-mode dropout (RNG mask + 1/(1-p) scale) not emitted.

    # residual
    h = h + projected

    # LayerNorm over the full (unpadded) feature dim -> no masking needed.
    inv_p = jnp.float32(1.0 / h.shape[-1])
    mean = jnp.sum(h, axis=-1, keepdims=True) * inv_p
    centered = h - mean
    var = jnp.sum(centered * centered, axis=-1, keepdims=True) * inv_p
    y = centered * jax.lax.rsqrt(var + eps) * gamma + beta

    o_ref[...] = y.astype(o_ref.dtype)


def _choose_tile_m(n_rows, e, p, itemsize, budget):
    """Largest power-of-two row tile whose VMEM footprint fits `budget`.

    VMEM lane/sublane layout pads the last dim to 128 (and small leading dims
    to 8), so the footprint math uses the padded sizes even though the HBM
    arrays are unpadded."""
    e_v = _round_up(e, 128)
    p_v = _round_up(p, 128)
    # Weights + stacked vectors: single-buffered (pl.Buffered(1)).
    weights = (e_v * p_v + p_v * p_v + 8 * p_v) * itemsize
    tile_m = 1024
    while tile_m > 8:
        act = tile_m * (e_v + p_v) * itemsize * 2   # x / out double-buffers
        tmp = tile_m * p_v * 4 * 6                  # ~6 live f32 tile temporaries
        if weights + act + tmp <= budget:
            break
        tile_m //= 2
    # No point in a tile taller than the (8-row-rounded) input.
    tile_m = min(tile_m, _round_up(n_rows, 8))
    return max(tile_m, 8)


def embed_head(x, w_proj, b_proj, w_fc, b_fc, gamma, beta, *, eps=1e-5,
               dropout_p=0.0, training=False, approximate_gelu=False):
    """x: [N, E] -> [N, P] (fused EmbedHead forward)."""
    if training and dropout_p > 0.0:
        # TODO(synk): implement training-mode dropout inside the kernel.
        raise NotImplementedError(
            "EmbedHead Pallas kernel implements eval-mode (identity) dropout only.")

    n, e = x.shape
    p = w_proj.shape[1]
    itemsize = x.dtype.itemsize

    vmem_cap = _vmem_capacity_bytes()
    budget = (vmem_cap * 3) // 5          # ~60% of physical VMEM for blocks

    tile_m = _choose_tile_m(n, e, p, itemsize, budget)
    # Guarantee >= 2 grid steps when N allows it so v7x's 2nd TensorCore gets work.
    if n > 8:
        tile_m = min(tile_m, max(8, _round_up(pl.cdiv(n, 2), 8)))

    grid = (pl.cdiv(n, tile_m),)          # ragged last block handled by Pallas

    # One DMA / one resident buffer for the four (P,)-vectors.
    vecs = jnp.stack([b_proj, b_fc, gamma, beta], axis=0)

    # Scoped-VMEM limit: conservative (weights counted double-buffered so the
    # no-pipeline_mode fallback also fits), capped at 75% of physical VMEM.
    e_v = _round_up(e, 128)
    p_v = _round_up(p, 128)
    block_bytes = (tile_m * (e_v + p_v) * itemsize * 2
                   + (e_v * p_v + p_v * p_v + 8 * p_v) * itemsize * 2
                   + tile_m * p_v * 4 * 6)
    vmem_limit = int(min(max(block_bytes * 5 // 4, 32 * 1024 * 1024),
                         (vmem_cap * 3) // 4))

    cost = pl.CostEstimate(
        flops=2 * n * (e * p + p * p),
        transcendentals=n * p,
        bytes_accessed=(n * e + n * p + e * p + p * p + 4 * p) * itemsize,
    )

    kernel = functools.partial(embed_head_kernel, eps=eps,
                               approximate_gelu=approximate_gelu)

    def make_call(single_buffer_weights):
        inv_kw = ({"pipeline_mode": pl.Buffered(1)}
                  if single_buffer_weights else {})
        return pl.pallas_call(
            kernel,
            out_shape=jax.ShapeDtypeStruct((n, p), x.dtype),
            grid_spec=pltpu.PrefetchScalarGridSpec(
                num_scalar_prefetch=0,
                grid=grid,
                in_specs=[
                    pl.BlockSpec((tile_m, e), lambda i: (i, 0)),          # x rows
                    pl.BlockSpec((e, p), lambda i: (0, 0), **inv_kw),     # W_proj
                    pl.BlockSpec((p, p), lambda i: (0, 0), **inv_kw),     # W_fc
                    pl.BlockSpec((4, p), lambda i: (0, 0), **inv_kw),     # [bp,bf,g,b]
                ],
                out_specs=pl.BlockSpec((tile_m, p), lambda i: (i, 0)),
            ),
            compiler_params=pltpu.CompilerParams(
                dimension_semantics=("parallel",),
                vmem_limit_bytes=vmem_limit,
            ),
            cost_estimate=cost,
        )

    try:
        return make_call(True)(x, w_proj, w_fc, vecs)
    except Exception:
        # Fallback for environments where pipeline_mode / Buffered(1) is
        # not supported: identical kernel, default double-buffering.
        return make_call(False)(x, w_proj, w_fc, vecs)


def embed_head_ref(x, w_proj, b_proj, w_fc, b_fc, gamma, beta, eps=1e-5):
    projected = x @ w_proj + b_proj
    h = 0.5 * projected * (1.0 + jax.lax.erf(projected / jnp.sqrt(2.0)))
    h = h @ w_fc + b_fc
    h = h + projected
    mu = jnp.mean(h, axis=-1, keepdims=True)
    var = jnp.mean((h - mu) ** 2, axis=-1, keepdims=True)
    return (h - mu) * jax.lax.rsqrt(var + eps) * gamma + beta


if __name__ == "__main__":
    # Small shapes implied by the module: batch=2, seq=8,
    # embedding_dim=32, projection_dim=32.
    batch, seq = 2, 8
    embedding_dim, projection_dim = 32, 32

    key = jax.random.PRNGKey(0)
    kx, kwp, kbp, kwf, kbf = jax.random.split(key, 5)

    x = jax.random.normal(kx, (batch, seq, embedding_dim), dtype=jnp.float32)

    # Deterministic parameter init (synthetic; roughly Linear-like scale).
    w_proj = jax.random.normal(kwp, (embedding_dim, projection_dim),
                               dtype=jnp.float32) / jnp.sqrt(embedding_dim)
    b_proj = jax.random.normal(kbp, (projection_dim,), dtype=jnp.float32) * 0.02
    w_fc = jax.random.normal(kwf, (projection_dim, projection_dim),
                             dtype=jnp.float32) / jnp.sqrt(projection_dim)
    b_fc = jax.random.normal(kbf, (projection_dim,), dtype=jnp.float32) * 0.02
    gamma = jnp.ones((projection_dim,), dtype=jnp.float32)
    beta = jnp.zeros((projection_dim,), dtype=jnp.float32)

    # Flatten [B, S, E] -> [N, E] for the kernel, restore at the end.
    x2d = x.reshape(batch * seq, embedding_dim)

    out2d = embed_head(x2d, w_proj, b_proj, w_fc, b_fc, gamma, beta)
    out = out2d.reshape(batch, seq, projection_dim)
    jax.block_until_ready(out)

    # Correctness check against a pure-JAX reference.
    ref = embed_head_ref(x2d, w_proj, b_proj, w_fc, b_fc, gamma, beta)
    ref = ref.reshape(batch, seq, projection_dim)
    assert jnp.allclose(out, ref, atol=1e-5, rtol=1e-5), (
        float(jnp.max(jnp.abs(out - ref))))

    print("KERNEL_OK")
</pallas_src>

<mosaic_0001>
module attributes {stable_mosaic.version = 11 : i64} {
  func.func @embed_head_kernel(%arg0: i32, %arg1: memref<8x32xf32, #tpu.memory_space<vmem>>, %arg2: memref<32x32xf32, #tpu.memory_space<vmem>>, %arg3: memref<32x32xf32, #tpu.memory_space<vmem>>, %arg4: memref<4x32xf32, #tpu.memory_space<vmem>>, %arg5: memref<8x32xf32, #tpu.memory_space<vmem>>) attributes {dimension_semantics = [#tpu.dimension_semantics<parallel>], iteration_bounds = array<i64: 2>, scalar_prefetch = 0 : i64, scratch_operands = 0 : i64, tpu.core_type = #tpu.core_type<tc>, window_params = [{transform_indices = @transform_0, window_bounds = array<i64: 8, 32>}, {pipeline_mode = #tpu.pipeline_mode<synchronous>, transform_indices = @transform_1, window_bounds = array<i64: 32, 32>}, {pipeline_mode = #tpu.pipeline_mode<synchronous>, transform_indices = @transform_2, window_bounds = array<i64: 32, 32>}, {pipeline_mode = #tpu.pipeline_mode<synchronous>, transform_indices = @transform_3, window_bounds = array<i64: 4, 32>}, {transform_indices = @transform_4, window_bounds = array<i64: 8, 32>}]} {
    %c0 = arith.constant 0 : index
    %c0_0 = arith.constant 0 : index
    %0 = vector.load %arg4[%c0, %c0_0] : memref<4x32xf32, #tpu.memory_space<vmem>>, vector<1x32xf32>
    %c1 = arith.constant 1 : index
    %c0_1 = arith.constant 0 : index
    %1 = vector.load %arg4[%c1, %c0_1] : memref<4x32xf32, #tpu.memory_space<vmem>>, vector<1x32xf32>
    %c2 = arith.constant 2 : index
    %c0_2 = arith.constant 0 : index
    %2 = vector.load %arg4[%c2, %c0_2] : memref<4x32xf32, #tpu.memory_space<vmem>>, vector<1x32xf32>
    %c3 = arith.constant 3 : index
    %c0_3 = arith.constant 0 : index
    %3 = vector.load %arg4[%c3, %c0_3] : memref<4x32xf32, #tpu.memory_space<vmem>>, vector<1x32xf32>
    %c0_4 = arith.constant 0 : index
    %c0_5 = arith.constant 0 : index
    %4 = vector.load %arg1[%c0_4, %c0_5] : memref<8x32xf32, #tpu.memory_space<vmem>>, vector<8x32xf32>
    %c0_6 = arith.constant 0 : index
    %c0_7 = arith.constant 0 : index
    %5 = vector.load %arg2[%c0_6, %c0_7] : memref<32x32xf32, #tpu.memory_space<vmem>>, vector<32x32xf32>
    %cst = arith.constant dense<0.000000e+00> : vector<8x32xf32>
    %6 = tpu.matmul %4, %5, %cst {dimension_numbers = #tpu.dot_dimension_numbers<[1], [0], [0], [1], [0, 0, 1, 1], [], []>} : vector<8x32xf32>, vector<32x32xf32>, vector<8x32xf32> -> vector<8x32xf32>
    %7 = vector.broadcast %0 : vector<1x32xf32> to vector<8x32xf32>
    %8 = arith.addf %6, %7 : vector<8x32xf32>
    %cst_8 = arith.constant 5.000000e-01 : f32
    %9 = vector.broadcast %cst_8 : f32 to vector<8x32xf32>
    %10 = arith.mulf %9, %8 : vector<8x32xf32>
    %cst_9 = arith.constant 2.000000e+00 : f32
    %11 = math.sqrt %cst_9 : f32
    %cst_10 = arith.constant 1.000000e+00 : f32
    %12 = arith.divf %cst_10, %11 : f32
    %13 = vector.broadcast %12 : f32 to vector<8x32xf32>
    %14 = arith.mulf %8, %13 : vector<8x32xf32>
    %15 = math.erf %14 : vector<8x32xf32>
    %cst_11 = arith.constant 1.000000e+00 : f32
    %16 = vector.broadcast %cst_11 : f32 to vector<8x32xf32>
    %17 = arith.addf %16, %15 : vector<8x32xf32>
    %18 = arith.mulf %10, %17 : vector<8x32xf32>
    %c0_12 = arith.constant 0 : index
    %c0_13 = arith.constant 0 : index
    %19 = vector.load %arg3[%c0_12, %c0_13] : memref<32x32xf32, #tpu.memory_space<vmem>>, vector<32x32xf32>
    %cst_14 = arith.constant dense<0.000000e+00> : vector<8x32xf32>
    %20 = tpu.matmul %18, %19, %cst_14 {dimension_numbers = #tpu.dot_dimension_numbers<[1], [0], [0], [1], [0, 0, 1, 1], [], []>} : vector<8x32xf32>, vector<32x32xf32>, vector<8x32xf32> -> vector<8x32xf32>
    %21 = vector.broadcast %1 : vector<1x32xf32> to vector<8x32xf32>
    %22 = arith.addf %20, %21 : vector<8x32xf32>
    %23 = arith.addf %22, %8 : vector<8x32xf32>
    %cst_15 = arith.constant dense<0.000000e+00> : vector<8xf32>
    %24 = vector.multi_reduction <add>, %23, %cst_15 [1] : vector<8x32xf32> to vector<8xf32>
    %25 = vector.shape_cast %24 : vector<8xf32> to vector<8x1xf32>
    %cst_16 = arith.constant 3.125000e-02 : f32
    %26 = vector.broadcast %cst_16 : f32 to vector<8x1xf32>
    %27 = arith.mulf %25, %26 : vector<8x1xf32>
    %28 = vector.broadcast %27 : vector<8x1xf32> to vector<8x32xf32>
    %29 = arith.subf %23, %28 : vector<8x32xf32>
    %30 = arith.mulf %29, %29 : vector<8x32xf32>
    %cst_17 = arith.constant dense<0.000000e+00> : vector<8xf32>
    %31 = vector.multi_reduction <add>, %30, %cst_17 [1] : vector<8x32xf32> to vector<8xf32>
    %32 = vector.shape_cast %31 : vector<8xf32> to vector<8x1xf32>
    %cst_18 = arith.constant 3.125000e-02 : f32
    %33 = vector.broadcast %cst_18 : f32 to vector<8x1xf32>
    %34 = arith.mulf %32, %33 : vector<8x1xf32>
    %cst_19 = arith.constant 9.99999974E-6 : f32
    %35 = vector.broadcast %cst_19 : f32 to vector<8x1xf32>
    %36 = arith.addf %34, %35 : vector<8x1xf32>
    %37 = math.rsqrt %36 : vector<8x1xf32>
    %38 = vector.broadcast %37 : vector<8x1xf32> to vector<8x32xf32>
    %39 = arith.mulf %29, %38 : vector<8x32xf32>
    %40 = vector.broadcast %2 : vector<1x32xf32> to vector<8x32xf32>
    %41 = arith.mulf %39, %40 : vector<8x32xf32>
    %42 = vector.broadcast %3 : vector<1x32xf32> to vector<8x32xf32>
    %43 = arith.addf %41, %42 : vector<8x32xf32>
    %c0_20 = arith.constant 0 : index
    %c0_21 = arith.constant 0 : index
    %44 = vector.load %arg5[%c0_20, %c0_21] : memref<8x32xf32, #tpu.memory_space<vmem>>, vector<8x32xf32>
    tpu.vector_store %arg5[%c0_20, %c0_21], %43 {strides = array<i32>} : memref<8x32xf32, #tpu.memory_space<vmem>>, vector<8x32xf32>,
    return
  }
  func.func @transform_0(%arg0: i32) -> (i32, i32) {
    %c0_i32 = arith.constant 0 : i32
    %c0_i32_0 = arith.constant 0 : i32
    return %arg0, %c0_i32 : i32, i32
  }
  func.func @transform_1(%arg0: i32) -> (i32, i32) {
    %c0_i32 = arith.constant 0 : i32
    %c0_i32_0 = arith.constant 0 : i32
    %c0_i32_1 = arith.constant 0 : i32
    return %c0_i32, %c0_i32_0 : i32, i32
  }
  func.func @transform_2(%arg0: i32) -> (i32, i32) {
    %c0_i32 = arith.constant 0 : i32
    %c0_i32_0 = arith.constant 0 : i32
    %c0_i32_1 = arith.constant 0 : i32
    return %c0_i32, %c0_i32_0 : i32, i32
  }
  func.func @transform_3(%arg0: i32) -> (i32, i32) {
    %c0_i32 = arith.constant 0 : i32
    %c0_i32_0 = arith.constant 0 : i32
    %c0_i32_1 = arith.constant 0 : i32
    return %c0_i32, %c0_i32_0 : i32, i32
  }
  func.func @transform_4(%arg0: i32) -> (i32, i32) {
    %c0_i32 = arith.constant 0 : i32
    %c0_i32_0 = arith.constant 0 : i32
    return %arg0, %c0_i32 : i32, i32
  }
}

module attributes {stable_mosaic.version = 11 : i64} {
  func.func @embed_head_kernel(%arg0: i32, %arg1: memref<8x32xf32, #tpu.memory_space<vmem>>, %arg2: memref<32x32xf32, #tpu.memory_space<vmem>>, %arg3: memref<32x32xf32, #tpu.memory_space<vmem>>, %arg4: memref<4x32xf32, #tpu.memory_space<vmem>>, %arg5: memref<8x32xf32, #tpu.memory_space<vmem>>) attributes {dimension_semantics = [#tpu.dimension_semantics<parallel>], iteration_bounds = array<i64: 2>, scalar_prefetch = 0 : i64, scratch_operands = 0 : i64, tpu.core_type = #tpu.core_type<tc>, window_params = [{transform_indices = @transform_0, window_bounds = array<i64: 8, 32>}, {pipeline_mode = #tpu.pipeline_mode<synchronous>, transform_indices = @transform_1, window_bounds = array<i64: 32, 32>}, {pipeline_mode = #tpu.pipeline_mode<synchronous>, transform_indices = @transform_2, window_bounds = array<i64: 32, 32>}, {pipeline_mode = #tpu.pipeline_mode<synchronous>, transform_indices = @transform_3, window_bounds = array<i64: 4, 32>}, {transform_indices = @transform_4, window_bounds = array<i64: 8, 32>}]} {
    %c0 = arith.constant 0 : index
    %c0_0 = arith.constant 0 : index
    %0 = vector.load %arg4[%c0, %c0_0] : memref<4x32xf32, #tpu.memory_space<vmem>>, vector<1x32xf32>
    %c1 = arith.constant 1 : index
    %c0_1 = arith.constant 0 : index
    %1 = vector.load %arg4[%c1, %c0_1] : memref<4x32xf32, #tpu.memory_space<vmem>>, vector<1x32xf32>
    %c2 = arith.constant 2 : index
    %c0_2 = arith.constant 0 : index
    %2 = vector.load %arg4[%c2, %c0_2] : memref<4x32xf32, #tpu.memory_space<vmem>>, vector<1x32xf32>
    %c3 = arith.constant 3 : index
    %c0_3 = arith.constant 0 : index
    %3 = vector.load %arg4[%c3, %c0_3] : memref<4x32xf32, #tpu.memory_space<vmem>>, vector<1x32xf32>
    %c0_4 = arith.constant 0 : index
    %c0_5 = arith.constant 0 : index
    %4 = vector.load %arg1[%c0_4, %c0_5] : memref<8x32xf32, #tpu.memory_space<vmem>>, vector<8x32xf32>
    %c0_6 = arith.constant 0 : index
    %c0_7 = arith.constant 0 : index
    %5 = vector.load %arg2[%c0_6, %c0_7] : memref<32x32xf32, #tpu.memory_space<vmem>>, vector<32x32xf32>
    %cst = arith.constant dense<0.000000e+00> : vector<8x32xf32>
    %6 = tpu.matmul %4, %5, %cst {dimension_numbers = #tpu.dot_dimension_numbers<[1], [0], [0], [1], [0, 0, 1, 1], [], []>} : vector<8x32xf32>, vector<32x32xf32>, vector<8x32xf32> -> vector<8x32xf32>
    %7 = vector.broadcast %0 : vector<1x32xf32> to vector<8x32xf32>
    %8 = arith.addf %6, %7 : vector<8x32xf32>
    %cst_8 = arith.constant 5.000000e-01 : f32
    %9 = vector.broadcast %cst_8 : f32 to vector<8x32xf32>
    %10 = arith.mulf %9, %8 : vector<8x32xf32>
    %cst_9 = arith.constant 2.000000e+00 : f32
    %11 = math.sqrt %cst_9 : f32
    %cst_10 = arith.constant 1.000000e+00 : f32
    %12 = arith.divf %cst_10, %11 : f32
    %13 = vector.broadcast %12 : f32 to vector<8x32xf32>
    %14 = arith.mulf %8, %13 : vector<8x32xf32>
    %15 = math.erf %14 : vector<8x32xf32>
    %cst_11 = arith.constant 1.000000e+00 : f32
    %16 = vector.broadcast %cst_11 : f32 to vector<8x32xf32>
    %17 = arith.addf %16, %15 : vector<8x32xf32>
    %18 = arith.mulf %10, %17 : vector<8x32xf32>
    %c0_12 = arith.constant 0 : index
    %c0_13 = arith.constant 0 : index
    %19 = vector.load %arg3[%c0_12, %c0_13] : memref<32x32xf32, #tpu.memory_space<vmem>>, vector<32x32xf32>
    %cst_14 = arith.constant dense<0.000000e+00> : vector<8x32xf32>
    %20 = tpu.matmul %18, %19, %cst_14 {dimension_numbers = #tpu.dot_dimension_numbers<[1], [0], [0], [1], [0, 0, 1, 1], [], []>} : vector<8x32xf32>, vector<32x32xf32>, vector<8x32xf32> -> vector<8x32xf32>
    %21 = vector.broadcast %1 : vector<1x32xf32> to vector<8x32xf32>
    %22 = arith.addf %20, %21 : vector<8x32xf32>
    %23 = arith.addf %22, %8 : vector<8x32xf32>
    %cst_15 = arith.constant dense<0.000000e+00> : vector<8xf32>
    %24 = vector.multi_reduction <add>, %23, %cst_15 [1] : vector<8x32xf32> to vector<8xf32>
    %25 = vector.shape_cast %24 : vector<8xf32> to vector<8x1xf32>
    %cst_16 = arith.constant 3.125000e-02 : f32
    %26 = vector.broadcast %cst_16 : f32 to vector<8x1xf32>
    %27 = arith.mulf %25, %26 : vector<8x1xf32>
    %28 = vector.broadcast %27 : vector<8x1xf32> to vector<8x32xf32>
    %29 = arith.subf %23, %28 : vector<8x32xf32>
    %30 = arith.mulf %29, %29 : vector<8x32xf32>
    %cst_17 = arith.constant dense<0.000000e+00> : vector<8xf32>
    %31 = vector.multi_reduction <add>, %30, %cst_17 [1] : vector<8x32xf32> to vector<8xf32>
    %32 = vector.shape_cast %31 : vector<8xf32> to vector<8x1xf32>
    %cst_18 = arith.constant 3.125000e-02 : f32
    %33 = vector.broadcast %cst_18 : f32 to vector<8x1xf32>
    %34 = arith.mulf %32, %33 : vector<8x1xf32>
    %cst_19 = arith.constant 9.99999974E-6 : f32
    %35 = vector.broadcast %cst_19 : f32 to vector<8x1xf32>
    %36 = arith.addf %34, %35 : vector<8x1xf32>
    %37 = math.rsqrt %36 : vector<8x1xf32>
    %38 = vector.broadcast %37 : vector<8x1xf32> to vector<8x32xf32>
    %39 = arith.mulf %29, %38 : vector<8x32xf32>
    %40 = vector.broadcast %2 : vector<1x32xf32> to vector<8x32xf32>
    %41 = arith.mulf %39, %40 : vector<8x32xf32>
    %42 = vector.broadcast %3 : vector<1x32xf32> to vector<8x32xf32>
    %43 = arith.addf %41, %42 : vector<8x32xf32>
    %c0_20 = arith.constant 0 : index
    %c0_21 = arith.constant 0 : index
    %44 = vector.load %arg5[%c0_20, %c0_21] : memref<8x32xf32, #tpu.memory_space<vmem>>, vector<8x32xf32>
    tpu.vector_store %arg5[%c0_20, %c0_21], %43 {strides = array<i32>} : memref<8x32xf32, #tpu.memory_space<vmem>>, vector<8x32xf32>,
    return
  }
  func.func @transform_0(%arg0: i32) -> (i32, i32) {
    %c0_i32 = arith.constant 0 : i32
    %c0_i32_0 = arith.constant 0 : i32
    return %arg0, %c0_i32 : i32, i32
  }
  func.func @transform_1(%arg0: i32) -> (i32, i32) {
    %c0_i32 = arith.constant 0 : i32
    %c0_i32_0 = arith.constant 0 : i32
    %c0_i32_1 = arith.constant 0 : i32
    return %c0_i32, %c0_i32_0 : i32, i32
  }
  func.func @transform_2(%arg0: i32) -> (i32, i32) {
    %c0_i32 = arith.constant 0 : i32
    %c0_i32_0 = arith.constant 0 : i32
    %c0_i32_1 = arith.constant 0 : i32
    return %c0_i32, %c0_i32_0 : i32, i32
  }
  func.func @transform_3(%arg0: i32) -> (i32, i32) {
    %c0_i32 = arith.constant 0 : i32
    %c0_i32_0 = arith.constant 0 : i32
    %c0_i32_1 = arith.constant 0 : i32
    return %c0_i32, %c0_i32_0 : i32, i32
  }
  func.func @transform_4(%arg0: i32) -> (i32, i32) {
    %c0_i32 = arith.constant 0 : i32
    %c0_i32_0 = arith.constant 0 : i32
    return %arg0, %c0_i32 : i32, i32
  }
}

</mosaic_0001>

<bundles_post_ra>
// kernel: tpu_custom_call.1
= control target key start
LH: loop header
LB: loop body
LE: loop exit
PB: predicated region body
PF: predicated region fallthrough
CT: control target
= control target key end

     0   :  { %9 = vsyncpa [#allocation3], 0  ;;  %s1011_s0 = inlined_call_operand.hbm [shape: f32[16,32], index: 0, kind: input, shape index: {}]   ;;  %s1012_s1 = inlined_call_operand.hbm [shape: f32[32,32], index: 1, kind: input, shape index: {}]   ;;  %s1013_s2 = inlined_call_operand.hbm [shape: f32[32,32], index: 2, kind: input, shape index: {}]   ;;  %s1014_s3 = inlined_call_operand.hbm [shape: f32[4,32], index: 3, kind: input, shape index: {}]   ;;  %s1015_s4 = inlined_call_operand.hbm [shape: f32[16,32], index: 4, kind: output, shape index: {}]  }
   0x1   :  { %11 = vsyncpa [#allocation3 + $0x1], 0 }
   0x2   :  { %12 = vsyncpa [#allocation6], 0 }
   0x3   :  { %13 = vsyncpa [#allocation9], 0 }
   0x4   :  { %14 = vsyncpa [#allocation4], 0 }
   0x5   :  { %16 = vsyncpa [#allocation4 + $0x1], 0  ;;  %s846_s15 = smov 0   ;;  %s848_s16 = smov 0  }
   0x6   :  { %s850_s17 = smov 0   ;;  %s852_s18 = smov 0  }
   0x7 LB: > { %s153_s21 = sshll.u32 %s1012_s1, 4  ;;  %s870_s22 = sadd.s32 4294967295, %s814_s18   ;;  %s814_s18 = sphi %s852_s18, %s1026_s18   ;;  %s810_s17 = sphi %s850_s17, %s1025_s17   ;;  %s806_s16 = sphi %s848_s16, %s1024_s16   ;;  %s802_s15 = sphi %s846_s15, %s1023_s15   ;;  %s154_s21 = int_to_ptr.hbm [resolvable:$true] %s153_s21 }
   0x8   : > { %p513_p0 = scmp.ge.s32.totalorder %s814_s18, 1  ;;  %p43_p1 = scmp.eq.s32.totalorder %s870_s22, 0 }
   0x9   : > { %p142_p2 = scmp.lt.s32.totalorder %s814_s18, 3  ;;  %s816_s24 = smov [#allocation5]  }
   0xa   : > { %s155_s25 = sshll.u32 %s816_s24, 4  ;;  %s167_s28 = sshll.u32 %s1013_s2, 4  ;;  %s156_s25 = int_to_ptr.vmem [resolvable:$true] %s155_s25  ;;  %s168_s28 = int_to_ptr.hbm [resolvable:$true] %s167_s28 }
   0xb   : > { %p875_p3 = pnand %p513_p0, %p142_p2  ;;  %s182_s6 = sshll.u32 %s1014_s3, 4  ;;  %s183_s6 = int_to_ptr.hbm [resolvable:$true] %s182_s6 }
   0xc   : > { %s817_s7 = smov [#allocation7]   ;;  %s818_s9 = smov 128  }
   0xd   : > { %p549_p4 = pneg %p875_p3  ;;  %s169_s8 = sshll.u32 %s817_s7, 4  ;;  %s170_s8 = int_to_ptr.vmem [resolvable:$true] %s169_s8 }
   0xe   : > { %s819_s10 = smov 8   ;;  %s820_s11 = smov [#allocation8]  }
   0xf   : > { %p887_p6 = pnand %p549_p4, %p43_p1  ;;  %s184_s12 = sshll.u32 %s820_s11, 4  ;;  %s185_s12 = int_to_ptr.vmem [resolvable:$true] %s184_s12 }
  0x10   : > { %s512_s13 = sadd.s32 4294967294, %s814_s18   ;;  %s902_s14 = sadd.s32 1, %s814_s18  }
  0x11   : > { %552 = dma.hbm_to_vmem [thread:$0]  (!%p887_p6), %s154_s21, 512, %s156_s25, [#allocation6], %s818_s9, %s818_s9, %s819_s10  }
  0x12   : > { %555 = dma.hbm_to_vmem [thread:$0]  (!%p887_p6), %s168_s28, 512, %s170_s8, [#allocation6], %s818_s9, %s818_s9, %s819_s10  }
  0x13   : > { %558 = dma.hbm_to_vmem [thread:$0]  (!%p887_p6), %s183_s6, 64, %s185_s12, [#allocation9]  }
  0x14   : > { %s29_s19 = sadd.s32 1, %s810_s17  ;;  %s26_s20 = ssub.s32 %s814_s18, %s902_s14 }
  0x15   : > { %p36_p7 = scmp.ne.s32.totalorder %s810_s17, %s806_s16  ;;  %p27_p8 = scmp.eq.s32.totalorder %s26_s20, 0 }
  0x16   : > { %p37_p9 = scmp.eq.s32.totalorder %s814_s18, 0  ;;  %p42_p10 = scmp.ne.s32.totalorder %s806_s16, %s802_s15 }
  0x17   : > { %p129_p11 = scmp.eq.s32.totalorder %s870_s22, 1  ;;  %p135_p0 = scmp.eq.s32.totalorder %s512_s13, 1 }
  0x18   : > { %s914_s21 = scalar_select %p27_p8, %s810_s17, %s29_s19  }
  0x19   : > { %p918_p12 = por %p43_p1, %p42_p10  ;;  %p922_p13 = por %p129_p11, %p36_p7 }
  0x1a   : > { %p38_p2 = por %p37_p9, %p36_p7  ;;  %s195_s26 = sand.u32 1, %s810_s17  }
  0x1b   : > { %p927_p4 = por %p135_p0, %p42_p10  ;;  %p570_p6 = scmp.lt.s32.totalorder %s814_s18, 2 }
  0x1c   : > { %s518_s28 = sshll.u32 %s195_s26, 3  ;;  %s519_s29 = sshll.u32 %s814_s18, 3 }
  0x1d   : > { %s203_s6 = scalar_lea.hbm %s1011_s0, %s519_s29  ;;  %s199_s8 = scalar_lea.vmem [#allocation2], %s518_s28 }
  0x1e   : > { %s205_s7 = sshll.u32 %s203_s6, 4  ;;  %s207_s9 = sshll.u32 %s199_s8, 4  ;;  %s206_s7 = int_to_ptr.hbm [resolvable:$true] %s205_s7  ;;  %s208_s9 = int_to_ptr.vmem [resolvable:$true] %s207_s9 }
  0x1f   : > { %p936_p8 = pnand %p570_p6, %p38_p2  ;;  %s196_s11 = scalar_lea.sflag [#allocation3], %s195_s26 }
  0x20   : > { %s710_s12 = sshra.s32 %s206_s7, 4  ;;  %s717_s28 = scalar_lea.hbm %s1011_s0, 16  ;;  %s711_s12 = int_to_ptr.hbm [resolvable:$true] %s710_s12 }
  0x21   : > { %s712_s13 = scalar_lea.hbm %s711_s12, 8  ;;  %p714_p9 = pneg %p936_p8 }
  0x22   : > { %p713_p7 = scmp.ne.s32.totalorder %s711_s12, %s712_s13  ;;  %p718_p0 = scmp.lt.s32.totalorder %s711_s12, %s1011_s0 }
  0x23   : > { %p719_p2 = scmp.lt.s32.totalorder %s717_s28, %s712_s13 }
  0x24   : > { %p715_p10 = pnand %p714_p9, %p713_p7 }
  0x25   : > { %p720_p6 = por %p719_p2, %p718_p0 }
  0x26   : > { %p716_p11 = pneg %p715_p10 }
  0x28   : > { %p721_p5 = pnand %p720_p6, %p716_p11 }
  0x2a   : > { %724 = shalt.err (!%p721_p5)
}
  0x2b   : > { %562 = dma.hbm_to_vmem [thread:$0]  (!%p936_p8), %s206_s7, 128, %s208_s9, %s196_s11  }
  0x2c   : > { %216 = sbr.rel (%p875_p3) target bundleno = 642 (0x282), region = 36  ;;  %s953_s26 = sand.u32 (!%p875_p3), 1, %s806_s16  }
  0x2d   : > { %s521_s5 = sshll.u32 (!%p875_p3), %s953_s26, 3  ;;  %s219_s6 = scalar_lea.sflag (!%p875_p3), [#allocation3], %s953_s26 }
  0x2e   : > { %s222_s8 = scalar_lea.vmem (!%p875_p3), [#allocation2], %s521_s5 }
  0x31   : > { %785 = dma.done.wait (%p918_p12), %s219_s6, 128  }
  0x32   : > { %787 = vsyncadd (%p918_p12), %s219_s6, 4294967168 }
  0x33   : > { %789 = dma.done.wait (%p43_p1), [#allocation6], 1024  }
  0x34   : > { %791 = vsyncadd (%p43_p1), [#allocation6], 4294966272 }
  0x35   : > { %793 = dma.done.wait (%p43_p1), [#allocation9], 64  }
  0x36   : > { %795 = vsyncadd (%p43_p1), [#allocation9], 4294967232  ;;  %v271_v0 = vld [vmem:[#allocation5 + $0x18] sm:$0xff]  ;;  %v270_v1 = vld [vmem:[#allocation5 + $0x10] sm:$0xff]  ;;  %vm273_vm0 = vcmask 261120   ;;  %s530_s23 = sshll.u32 %s870_s22, 3 }
  0x37   : > { %289 = vmatpush.msra.mxu0 %v271_v0  ;;  %v269_v2 = vld [vmem:[#allocation5 + $0x8] sm:$0xff]  ;;  %v268_v3 = vld [vmem:[#allocation5] sm:$0xff]  ;;  %v267_v4 = vld [vmem:[%s222_s8] sm:$0xff]  ;;  %s408_s9 = scalar_lea.hbm %s1015_s4, %s530_s23  ;;  %s262_s10 = scalar_lea.vmem [#allocation10], %s521_s5 }
  0x38   : > { %v612_v5 = vld [vmem:[#allocation8] ss:$0 sm:$0xff]  ;;  %v344_v6 = vld [vmem:[#allocation7 + $0x18] sm:$0xff]  ;;  %v343_v7 = vld [vmem:[#allocation7 + $0x10] sm:$0xff]  ;;  %s410_s11 = sshll.u32 %s262_s10, 4  ;;  %s412_s12 = sshll.u32 %s408_s9, 4  ;;  %s411_s11 = int_to_ptr.vmem [resolvable:$true] %s410_s11  ;;  %s413_s12 = int_to_ptr.hbm [resolvable:$true] %s412_s12 }
  0x39   : > { %290 = vmatpush.msra.mxu0 %v270_v1  ;;  %361 = vmatpush.msra.mxu1 %v344_v6  ;;  %v342_v8 = vld [vmem:[#allocation7 + $0x8] sm:$0xff]  ;;  %v341_v11 = vld [vmem:[#allocation7] sm:$0xff]  ;;  %s398_s22 = scalar_lea.sflag [#allocation4], %s953_s26  ;;  %s754_s13 = sshra.s32 %s413_s12, 4  ;;  %s755_s13 = int_to_ptr.hbm [resolvable:$true] %s754_s13 }
  0x3a   : > { %v613_v51 = vld [vmem:[#allocation8 + $0x1] ss:$0 sm:$0xff]  ;;  %v614_v6 = vld [vmem:[#allocation8 + $0x2] ss:$0 sm:$0xff]  ;;  %s756_s19 = scalar_lea.hbm %s755_s13, 8  ;;  %s760_s29 = scalar_lea.hbm %s1015_s4, 16 }
  0x3b   : > { %291 = vmatpush.msra.mxu0 %v269_v2  ;;  %362 = vmatpush.msra.mxu1 %v343_v7  ;;  %p757_p1 = scmp.ne.s32.totalorder %s755_s13, %s756_s19  ;;  %p761_p12 = scmp.lt.s32.totalorder %s755_s13, %s1015_s4 }
  0x3c   : > { %p762_p8 = scmp.lt.s32.totalorder %s760_s29, %s756_s19 }
  0x3d   : > { %292 = vmatpush.msra.mxu0 %v268_v3  ;;  %363 = vmatpush.msra.mxu1 %v342_v8  ;;  %v615_v8 = vld [vmem:[#allocation8 + $0x3] ss:$0 sm:$0xff]  ;;  %p758_p3 = pnand %p757_p1, %p922_p13 }
  0x3e   : > { %526 = vmatmul.msk.f32.vlgmr.msra.gmra.mxu0 %vm273_vm0, %v267_v4  ;;  %p763_p7 = por %p762_p8, %p761_p12 }
  0x3f   : > { %364 = vmatpush.msra.mxu1 %v341_v11  ;;  %p759_p5 = pneg %p758_p3 }
  0x41   : > { %p764_p9 = pnand %p763_p7, %p759_p5 }
  0xbb   : > { %v294_v9 = vpop.f32.mrf.mxu0 }
  0xbc   : > { %v295_v10 = vadd.f32 %v612_v5, %v294_v9 }
  0xbe   : > { %v298_v12 = vmul.f32 0.70710677, %v295_v10  ;;  %v297_v48 = vmul.f32 0.5, %v295_v10 }
  0xc0   : > { %v299_v13 = vmul.f32 %v298_v12, %v298_v12 }
  0xc2   : > { %v300_v14 = vmin.f32 %v299_v13, 16.0 }
  0xc4   : > { %v301_v15 = vmul.f32 2.1237322e-06, %v300_v14  ;;  %v312_v16 = vmul.f32 3.8918573e-05, %v300_v14 }
  0xc6   : > { %v302_v17 = vadd.f32 0.00028619796, %v301_v15  ;;  %v313_v18 = vadd.f32 0.001143296, %v312_v16 }
  0xc8   : > { %v303_v19 = vmul.f32 %v302_v17, %v300_v14  ;;  %v314_v20 = vmul.f32 %v313_v18, %v300_v14 }
  0xca   : > { %v315_v21 = vadd.f32 0.014752088, %v314_v20  ;;  %v304_v22 = vadd.f32 0.0036580483, %v303_v19 }
  0xcc   : > { %v316_v23 = vmul.f32 %v315_v21, %v300_v14  ;;  %v305_v25 = vmul.f32 %v304_v22, %v300_v14 }
  0xce   : > { %v317_v24 = vadd.f32 0.112945676, %v316_v23  ;;  %v306_v28 = vadd.f32 0.05243302, %v305_v25 }
  0xd0   : > { %v318_v26 = vmul.f32 %v317_v24, %v300_v14  ;;  %v307_v31 = vmul.f32 %v306_v28, %v300_v14 }
  0xd2   : > { %v319_v27 = vadd.f32 0.4994258, %v318_v26  ;;  %v308_v32 = vadd.f32 0.18741608, %v307_v31 }
  0xd4   : > { %v320_v29 = vmul.f32 %v319_v27, %v300_v14  ;;  %v309_v34 = vmul.f32 %v308_v32, %v300_v14 }
  0xd6   : > { %v321_v30 = vadd.f32 1.0, %v320_v29  ;;  %v310_v38 = vadd.f32 1.1283791, %v309_v34 }
  0xd8   : > { %616 = vrcp.f32 %v321_v30  ;;  %v333_v37 = vand.u32 2147483648, %v321_v30  ;;  %v331_v40 = vand.u32 2147483647, %v321_v30  ;;  %vm327_vm2 = vweird.f32 %v321_v30 }
  0xd9   : > { %v311_v43 = vmul.f32 %v310_v38, %v298_v12 }
  0xda   : > { %v334_v42 = vor.u32 1.1754944e-38, %v333_v37  ;;  %vm332_vm4 = vcmp.eq.f32.partialorder %v331_v40, 8.507059e+37 }
  0xde   : > { %v617_v33 = vpop.eup %616 }
  0xdf   : > { %v323_v35 = vmul.f32 %v617_v33, %v321_v30  ;;  %vm328_vm1 = vweird.f32 %v617_v33 }
  0xe0   : > { %vm329_vm3 = vmor %vm327_vm2, %vm328_vm1 }
  0xe1   : > { %v324_v36 = vsub.f32 1.0, %v323_v35 }
  0xe3   : > { %v325_v39 = vmul.f32 %v617_v33, %v324_v36 }
  0xe5   : > { %v326_v41 = vadd.f32 %v617_v33, %v325_v39 }
  0xe7   : > { %v330_v44 = vsel %vm329_vm3, %v617_v33, %v326_v41 }
  0xe8   : > { %v335_v45 = vsel %vm332_vm4, %v334_v42, %v330_v44 }
  0xe9   : > { %v336_v46 = vmul.f32 %v335_v45, %v311_v43 }
  0xeb   : > { %v527_v47 = vclamps-f32 %v336_v46, 1.0 }
  0xed   : > { %v339_v49 = vadd.f32 1.0, %v527_v47 }
  0xef   : > { %v340_v50 = vmul.f32 %v339_v49, %v297_v48 }
  0xf1   : > { %528 = vmatmul.msk.f32.vlgmr.msra.gmra.mxu1 %vm273_vm0, %v340_v50 }
 0x16e   : > { %v366_v52 = vpop.f32.mrf.mxu1 }
 0x16f   : > { %v367_v53 = vadd.f32 %v613_v51, %v366_v52 }
 0x171   : > { %v369_v54 = vadd.f32 %v367_v53, %v295_v10 }
 0x173   : > { %v370_v55 = vsel %vm273_vm0, %v369_v54, 0.0 }
 0x174   : > { %371 = vadd.xlane.f32.xlu0 %v370_v55 }
 0x1e7   : > { %v372_v56 = vpop.xlane.xlu0 %371 }
 0x1e8   : > { %v373_v57 = vmul.f32 0.03125, %v372_v56 }
 0x1ea   : > { %v374_v58 = vsub.f32 %v369_v54, %v373_v57 }
 0x1ec   : > { %v375_v59 = vmul.f32 %v374_v58, %v374_v58 }
 0x1ee   : > { %v376_v60 = vsel %vm273_vm0, %v375_v59, 0.0 }
 0x1ef   : > { %377 = vadd.xlane.f32.xlu0 %v376_v60 }
 0x262   : > { %v378_v61 = vpop.xlane.xlu0 %377 }
 0x263   : > { %v379_v62 = vmul.f32 0.03125, %v378_v61 }
 0x265   : > { %v380_v63 = vadd.f32 1e-05, %v379_v62 }
 0x267   : > { %618 = vrsqrt.f32 %v380_v63  ;;  %vm387_vm6 = vweird.f32 %v380_v63 }
 0x26d   : > { %v619_v0 = vpop.eup %618 }
 0x26e   : > { %v382_v1 = vmul.f32 %v619_v0, %v380_v63  ;;  %vm388_vm5 = vweird.f32 %v619_v0 }
 0x26f   : > { %vm389_vm7 = vmor %vm387_vm6, %vm388_vm5 }
 0x270   : > { %v383_v2 = vmul.f32 %v619_v0, %v382_v1 }
 0x272   : > { %v384_v3 = vmul.f32 0.5, %v383_v2 }
 0x274   : > { %v385_v4 = vsub.f32 1.5, %v384_v3 }
 0x276   : > { %v386_v5 = vmul.f32 %v619_v0, %v385_v4 }
 0x278   : > { %v390_v7 = vsel %vm389_vm7, %v619_v0, %v386_v5 }
 0x279   : > { %v391_v9 = vmul.f32 %v390_v7, %v374_v58 }
 0x27b   : > { %v393_v10 = vmul.f32 %v614_v6, %v391_v9 }
 0x27d   : > { %v395_v11 = vadd.f32 %v615_v8, %v393_v10 }
 0x27f   : > { %396 = vst.msk [vmem:[%s262_s10] sm:$0xff] %vm273_vm0, %v395_v11 }
 0x280   : > { %767 = shalt.err (!%p764_p9)
}
 0x281   : > { %547 = dma.vmem_to_hbm [thread:$0]  (%p922_p13), %s411_s11, 128, %s413_s12, %s398_s22  }
 0x282 PF: > { %s424_s26 = sand.u32 1, %s802_s15   ;;  %p1022_p10 = scmp.ge.s32.totalorder %s814_s18, 2 }
 0x283   : > { %s425_s6 = scalar_lea.sflag [#allocation4], %s424_s26 }
 0x284   : > { %p564_p11 = pnand %p1022_p10, %p927_p4 }
 0x286   : > { %p565_p0 = pneg %p564_p11 }
 0x288   : > { %797 = dma.done.wait (%p565_p0), %s425_s6, 128  }
 0x289   : > { %799 = vsyncadd (%p565_p0), %s425_s6, 4294967168  ;;  %p19_p2 = scmp.ge.s32.totalorder %s902_s14, 4   ;;  %s1023_s15 = smov %s806_s16 }
 0x28a   : > { %s1024_s16 = smov %s810_s17  ;;  %s1025_s17 = smov %s914_s21 }
 0x28b   : > { %s1026_s18 = smov %s902_s14  ;;  %21 = sbr.rel (!%p19_p2) target bundleno = 7 (0x7), region = 93 }
 0x290   :  { %431 = vsyncpa [#allocation3], 1 }
 0x291   :  { %433 = vsyncpa [#allocation3 + $0x1], 1 }
 0x292   :  { %434 = vsyncpa [#allocation6], 1 }
 0x293   :  { %435 = vsyncpa [#allocation9], 1 }
 0x294   :  { %436 = vsyncpa [#allocation4], 1 }
 0x295   :  { %438 = vsyncpa [#allocation4 + $0x1], 1 }

// kernel: tpu_custom_call.1
= control target key start
LH: loop header
LB: loop body
LE: loop exit
PB: predicated region body
PF: predicated region fallthrough
CT: control target
= control target key end

     0   :  { %9 = vsyncpa [#allocation3], 0  ;;  %s1011_s0 = inlined_call_operand.hbm [shape: f32[16,32], index: 0, kind: input, shape index: {}]   ;;  %s1012_s1 = inlined_call_operand.hbm [shape: f32[32,32], index: 1, kind: input, shape index: {}]   ;;  %s1013_s2 = inlined_call_operand.hbm [shape: f32[32,32], index: 2, kind: input, shape index: {}]   ;;  %s1014_s3 = inlined_call_operand.hbm [shape: f32[4,32], index: 3, kind: input, shape index: {}]   ;;  %s1015_s4 = inlined_call_operand.hbm [shape: f32[16,32], index: 4, kind: output, shape index: {}]  }
   0x1   :  { %11 = vsyncpa [#allocation3 + $0x1], 0 }
   0x2   :  { %12 = vsyncpa [#allocation6], 0 }
   0x3   :  { %13 = vsyncpa [#allocation9], 0 }
   0x4   :  { %14 = vsyncpa [#allocation4], 0 }
   0x5   :  { %16 = vsyncpa [#allocation4 + $0x1], 0  ;;  %s846_s15 = smov 0   ;;  %s848_s16 = smov 0  }
   0x6   :  { %s850_s17 = smov 0   ;;  %s852_s18 = smov 0  }
   0x7 LB: > { %s153_s21 = sshll.u32 %s1012_s1, 4  ;;  %s870_s22 = sadd.s32 4294967295, %s814_s18   ;;  %s814_s18 = sphi %s852_s18, %s1026_s18   ;;  %s810_s17 = sphi %s850_s17, %s1025_s17   ;;  %s806_s16 = sphi %s848_s16, %s1024_s16   ;;  %s802_s15 = sphi %s846_s15, %s1023_s15   ;;  %s154_s21 = int_to_ptr.hbm [resolvable:$true] %s153_s21 }
   0x8   : > { %p513_p0 = scmp.ge.s32.totalorder %s814_s18, 1  ;;  %p43_p1 = scmp.eq.s32.totalorder %s870_s22, 0 }
   0x9   : > { %p142_p2 = scmp.lt.s32.totalorder %s814_s18, 3  ;;  %s816_s24 = smov [#allocation5]  }
   0xa   : > { %s155_s25 = sshll.u32 %s816_s24, 4  ;;  %s167_s28 = sshll.u32 %s1013_s2, 4  ;;  %s156_s25 = int_to_ptr.vmem [resolvable:$true] %s155_s25  ;;  %s168_s28 = int_to_ptr.hbm [resolvable:$true] %s167_s28 }
   0xb   : > { %p875_p3 = pnand %p513_p0, %p142_p2  ;;  %s182_s6 = sshll.u32 %s1014_s3, 4  ;;  %s183_s6 = int_to_ptr.hbm [resolvable:$true] %s182_s6 }
   0xc   : > { %s817_s7 = smov [#allocation7]   ;;  %s818_s9 = smov 128  }
   0xd   : > { %p549_p4 = pneg %p875_p3  ;;  %s169_s8 = sshll.u32 %s817_s7, 4  ;;  %s170_s8 = int_to_ptr.vmem [resolvable:$true] %s169_s8 }
   0xe   : > { %s819_s10 = smov 8   ;;  %s820_s11 = smov [#allocation8]  }
   0xf   : > { %p887_p6 = pnand %p549_p4, %p43_p1  ;;  %s184_s12 = sshll.u32 %s820_s11, 4  ;;  %s185_s12 = int_to_ptr.vmem [resolvable:$true] %s184_s12 }
  0x10   : > { %s512_s13 = sadd.s32 4294967294, %s814_s18   ;;  %s902_s14 = sadd.s32 1, %s814_s18  }
  0x11   : > { %552 = dma.hbm_to_vmem [thread:$0]  (!%p887_p6), %s154_s21, 512, %s156_s25, [#allocation6], %s818_s9, %s818_s9, %s819_s10  }
  0x12   : > { %555 = dma.hbm_to_vmem [thread:$0]  (!%p887_p6), %s168_s28, 512, %s170_s8, [#allocation6], %s818_s9, %s818_s9, %s819_s10  }
  0x13   : > { %558 = dma.hbm_to_vmem [thread:$0]  (!%p887_p6), %s183_s6, 64, %s185_s12, [#allocation9]  }
  0x14   : > { %s29_s19 = sadd.s32 1, %s810_s17  ;;  %s26_s20 = ssub.s32 %s814_s18, %s902_s14 }
  0x15   : > { %p36_p7 = scmp.ne.s32.totalorder %s810_s17, %s806_s16  ;;  %p27_p8 = scmp.eq.s32.totalorder %s26_s20, 0 }
  0x16   : > { %p37_p9 = scmp.eq.s32.totalorder %s814_s18, 0  ;;  %p42_p10 = scmp.ne.s32.totalorder %s806_s16, %s802_s15 }
  0x17   : > { %p129_p11 = scmp.eq.s32.totalorder %s870_s22, 1  ;;  %p135_p0 = scmp.eq.s32.totalorder %s512_s13, 1 }
  0x18   : > { %s914_s21 = scalar_select %p27_p8, %s810_s17, %s29_s19  }
  0x19   : > { %p918_p12 = por %p43_p1, %p42_p10  ;;  %p922_p13 = por %p129_p11, %p36_p7 }
  0x1a   : > { %p38_p2 = por %p37_p9, %p36_p7  ;;  %s195_s26 = sand.u32 1, %s810_s17  }
  0x1b   : > { %p927_p4 = por %p135_p0, %p42_p10  ;;  %p570_p6 = scmp.lt.s32.totalorder %s814_s18, 2 }
  0x1c   : > { %s518_s28 = sshll.u32 %s195_s26, 3  ;;  %s519_s29 = sshll.u32 %s814_s18, 3 }
  0x1d   : > { %s203_s6 = scalar_lea.hbm %s1011_s0, %s519_s29  ;;  %s199_s8 = scalar_lea.vmem [#allocation2], %s518_s28 }
  0x1e   : > { %s205_s7 = sshll.u32 %s203_s6, 4  ;;  %s207_s9 = sshll.u32 %s199_s8, 4  ;;  %s206_s7 = int_to_ptr.hbm [resolvable:$true] %s205_s7  ;;  %s208_s9 = int_to_ptr.vmem [resolvable:$true] %s207_s9 }
  0x1f   : > { %p936_p8 = pnand %p570_p6, %p38_p2  ;;  %s196_s11 = scalar_lea.sflag [#allocation3], %s195_s26 }
  0x20   : > { %s710_s12 = sshra.s32 %s206_s7, 4  ;;  %s717_s28 = scalar_lea.hbm %s1011_s0, 16  ;;  %s711_s12 = int_to_ptr.hbm [resolvable:$true] %s710_s12 }
  0x21   : > { %s712_s13 = scalar_lea.hbm %s711_s12, 8  ;;  %p714_p9 = pneg %p936_p8 }
  0x22   : > { %p713_p7 = scmp.ne.s32.totalorder %s711_s12, %s712_s13  ;;  %p718_p0 = scmp.lt.s32.totalorder %s711_s12, %s1011_s0 }
  0x23   : > { %p719_p2 = scmp.lt.s32.totalorder %s717_s28, %s712_s13 }
  0x24   : > { %p715_p10 = pnand %p714_p9, %p713_p7 }
  0x25   : > { %p720_p6 = por %p719_p2, %p718_p0 }
  0x26   : > { %p716_p11 = pneg %p715_p10 }
  0x28   : > { %p721_p5 = pnand %p720_p6, %p716_p11 }
  0x2a   : > { %724 = shalt.err (!%p721_p5)
}
  0x2b   : > { %562 = dma.hbm_to_vmem [thread:$0]  (!%p936_p8), %s206_s7, 128, %s208_s9, %s196_s11  }
  0x2c   : > { %216 = sbr.rel (%p875_p3) target bundleno = 642 (0x282), region = 36  ;;  %s953_s26 = sand.u32 (!%p875_p3), 1, %s806_s16  }
  0x2d   : > { %s521_s5 = sshll.u32 (!%p875_p3), %s953_s26, 3  ;;  %s219_s6 = scalar_lea.sflag (!%p875_p3), [#allocation3], %s953_s26 }
  0x2e   : > { %s222_s8 = scalar_lea.vmem (!%p875_p3), [#allocation2], %s521_s5 }
  0x31   : > { %785 = dma.done.wait (%p918_p12), %s219_s6, 128  }
  0x32   : > { %787 = vsyncadd (%p918_p12), %s219_s6, 4294967168 }
  0x33   : > { %789 = dma.done.wait (%p43_p1), [#allocation6], 1024  }
  0x34   : > { %791 = vsyncadd (%p43_p1), [#allocation6], 4294966272 }
  0x35   : > { %793 = dma.done.wait (%p43_p1), [#allocation9], 64  }
  0x36   : > { %795 = vsyncadd (%p43_p1), [#allocation9], 4294967232  ;;  %v271_v0 = vld [vmem:[#allocation5 + $0x18] sm:$0xff]  ;;  %v270_v1 = vld [vmem:[#allocation5 + $0x10] sm:$0xff]  ;;  %vm273_vm0 = vcmask 261120   ;;  %s530_s23 = sshll.u32 %s870_s22, 3 }
  0x37   : > { %289 = vmatpush.msra.mxu0 %v271_v0  ;;  %v269_v2 = vld [vmem:[#allocation5 + $0x8] sm:$0xff]  ;;  %v268_v3 = vld [vmem:[#allocation5] sm:$0xff]  ;;  %v267_v4 = vld [vmem:[%s222_s8] sm:$0xff]  ;;  %s408_s9 = scalar_lea.hbm %s1015_s4, %s530_s23  ;;  %s262_s10 = scalar_lea.vmem [#allocation10], %s521_s5 }
  0x38   : > { %v612_v5 = vld [vmem:[#allocation8] ss:$0 sm:$0xff]  ;;  %v344_v6 = vld [vmem:[#allocation7 + $0x18] sm:$0xff]  ;;  %v343_v7 = vld [vmem:[#allocation7 + $0x10] sm:$0xff]  ;;  %s410_s11 = sshll.u32 %s262_s10, 4  ;;  %s412_s12 = sshll.u32 %s408_s9, 4  ;;  %s411_s11 = int_to_ptr.vmem [resolvable:$true] %s410_s11  ;;  %s413_s12 = int_to_ptr.hbm [resolvable:$true] %s412_s12 }
  0x39   : > { %290 = vmatpush.msra.mxu0 %v270_v1  ;;  %361 = vmatpush.msra.mxu1 %v344_v6  ;;  %v342_v8 = vld [vmem:[#allocation7 + $0x8] sm:$0xff]  ;;  %v341_v11 = vld [vmem:[#allocation7] sm:$0xff]  ;;  %s398_s22 = scalar_lea.sflag [#allocation4], %s953_s26  ;;  %s754_s13 = sshra.s32 %s413_s12, 4  ;;  %s755_s13 = int_to_ptr.hbm [resolvable:$true] %s754_s13 }
  0x3a   : > { %v613_v51 = vld [vmem:[#allocation8 + $0x1] ss:$0 sm:$0xff]  ;;  %v614_v6 = vld [vmem:[#allocation8 + $0x2] ss:$0 sm:$0xff]  ;;  %s756_s19 = scalar_lea.hbm %s755_s13, 8  ;;  %s760_s29 = scalar_lea.hbm %s1015_s4, 16 }
  0x3b   : > { %291 = vmatpush.msra.mxu0 %v269_v2  ;;  %362 = vmatpush.msra.mxu1 %v343_v7  ;;  %p757_p1 = scmp.ne.s32.totalorder %s755_s13, %s756_s19  ;;  %p761_p12 = scmp.lt.s32.totalorder %s755_s13, %s1015_s4 }
  0x3c   : > { %p762_p8 = scmp.lt.s32.totalorder %s760_s29, %s756_s19 }
  0x3d   : > { %292 = vmatpush.msra.mxu0 %v268_v3  ;;  %363 = vmatpush.msra.mxu1 %v342_v8  ;;  %v615_v8 = vld [vmem:[#allocation8 + $0x3] ss:$0 sm:$0xff]  ;;  %p758_p3 = pnand %p757_p1, %p922_p13 }
  0x3e   : > { %526 = vmatmul.msk.f32.vlgmr.msra.gmra.mxu0 %vm273_vm0, %v267_v4  ;;  %p763_p7 = por %p762_p8, %p761_p12 }
  0x3f   : > { %364 = vmatpush.msra.mxu1 %v341_v11  ;;  %p759_p5 = pneg %p758_p3 }
  0x41   : > { %p764_p9 = pnand %p763_p7, %p759_p5 }
  0xbb   : > { %v294_v9 = vpop.f32.mrf.mxu0 }
  0xbc   : > { %v295_v10 = vadd.f32 %v612_v5, %v294_v9 }
  0xbe   : > { %v298_v12 = vmul.f32 0.70710677, %v295_v10  ;;  %v297_v48 = vmul.f32 0.5, %v295_v10 }
  0xc0   : > { %v299_v13 = vmul.f32 %v298_v12, %v298_v12 }
  0xc2   : > { %v300_v14 = vmin.f32 %v299_v13, 16.0 }
  0xc4   : > { %v301_v15 = vmul.f32 2.1237322e-06, %v300_v14  ;;  %v312_v16 = vmul.f32 3.8918573e-05, %v300_v14 }
  0xc6   : > { %v302_v17 = vadd.f32 0.00028619796, %v301_v15  ;;  %v313_v18 = vadd.f32 0.001143296, %v312_v16 }
  0xc8   : > { %v303_v19 = vmul.f32 %v302_v17, %v300_v14  ;;  %v314_v20 = vmul.f32 %v313_v18, %v300_v14 }
  0xca   : > { %v315_v21 = vadd.f32 0.014752088, %v314_v20  ;;  %v304_v22 = vadd.f32 0.0036580483, %v303_v19 }
  0xcc   : > { %v316_v23 = vmul.f32 %v315_v21, %v300_v14  ;;  %v305_v25 = vmul.f32 %v304_v22, %v300_v14 }
  0xce   : > { %v317_v24 = vadd.f32 0.112945676, %v316_v23  ;;  %v306_v28 = vadd.f32 0.05243302, %v305_v25 }
  0xd0   : > { %v318_v26 = vmul.f32 %v317_v24, %v300_v14  ;;  %v307_v31 = vmul.f32 %v306_v28, %v300_v14 }
  0xd2   : > { %v319_v27 = vadd.f32 0.4994258, %v318_v26  ;;  %v308_v32 = vadd.f32 0.18741608, %v307_v31 }
  0xd4   : > { %v320_v29 = vmul.f32 %v319_v27, %v300_v14  ;;  %v309_v34 = vmul.f32 %v308_v32, %v300_v14 }
  0xd6   : > { %v321_v30 = vadd.f32 1.0, %v320_v29  ;;  %v310_v38 = vadd.f32 1.1283791, %v309_v34 }
  0xd8   : > { %616 = vrcp.f32 %v321_v30  ;;  %v333_v37 = vand.u32 2147483648, %v321_v30  ;;  %v331_v40 = vand.u32 2147483647, %v321_v30  ;;  %vm327_vm2 = vweird.f32 %v321_v30 }
  0xd9   : > { %v311_v43 = vmul.f32 %v310_v38, %v298_v12 }
  0xda   : > { %v334_v42 = vor.u32 1.1754944e-38, %v333_v37  ;;  %vm332_vm4 = vcmp.eq.f32.partialorder %v331_v40, 8.507059e+37 }
  0xde   : > { %v617_v33 = vpop.eup %616 }
  0xdf   : > { %v323_v35 = vmul.f32 %v617_v33, %v321_v30  ;;  %vm328_vm1 = vweird.f32 %v617_v33 }
  0xe0   : > { %vm329_vm3 = vmor %vm327_vm2, %vm328_vm1 }
  0xe1   : > { %v324_v36 = vsub.f32 1.0, %v323_v35 }
  0xe3   : > { %v325_v39 = vmul.f32 %v617_v33, %v324_v36 }
  0xe5   : > { %v326_v41 = vadd.f32 %v617_v33, %v325_v39 }
  0xe7   : > { %v330_v44 = vsel %vm329_vm3, %v617_v33, %v326_v41 }
  0xe8   : > { %v335_v45 = vsel %vm332_vm4, %v334_v42, %v330_v44 }
  0xe9   : > { %v336_v46 = vmul.f32 %v335_v45, %v311_v43 }
  0xeb   : > { %v527_v47 = vclamps-f32 %v336_v46, 1.0 }
  0xed   : > { %v339_v49 = vadd.f32 1.0, %v527_v47 }
  0xef   : > { %v340_v50 = vmul.f32 %v339_v49, %v297_v48 }
  0xf1   : > { %528 = vmatmul.msk.f32.vlgmr.msra.gmra.mxu1 %vm273_vm0, %v340_v50 }
 0x16e   : > { %v366_v52 = vpop.f32.mrf.mxu1 }
 0x16f   : > { %v367_v53 = vadd.f32 %v613_v51, %v366_v52 }
 0x171   : > { %v369_v54 = vadd.f32 %v367_v53, %v295_v10 }
 0x173   : > { %v370_v55 = vsel %vm273_vm0, %v369_v54, 0.0 }
 0x174   : > { %371 = vadd.xlane.f32.xlu0 %v370_v55 }
 0x1e7   : > { %v372_v56 = vpop.xlane.xlu0 %371 }
 0x1e8   : > { %v373_v57 = vmul.f32 0.03125, %v372_v56 }
 0x1ea   : > { %v374_v58 = vsub.f32 %v369_v54, %v373_v57 }
 0x1ec   : > { %v375_v59 = vmul.f32 %v374_v58, %v374_v58 }
 0x1ee   : > { %v376_v60 = vsel %vm273_vm0, %v375_v59, 0.0 }
 0x1ef   : > { %377 = vadd.xlane.f32.xlu0 %v376_v60 }
 0x262   : > { %v378_v61 = vpop.xlane.xlu0 %377 }
 0x263   : > { %v379_v62 = vmul.f32 0.03125, %v378_v61 }
 0x265   : > { %v380_v63 = vadd.f32 1e-05, %v379_v62 }
 0x267   : > { %618 = vrsqrt.f32 %v380_v63  ;;  %vm387_vm6 = vweird.f32 %v380_v63 }
 0x26d   : > { %v619_v0 = vpop.eup %618 }
 0x26e   : > { %v382_v1 = vmul.f32 %v619_v0, %v380_v63  ;;  %vm388_vm5 = vweird.f32 %v619_v0 }
 0x26f   : > { %vm389_vm7 = vmor %vm387_vm6, %vm388_vm5 }
 0x270   : > { %v383_v2 = vmul.f32 %v619_v0, %v382_v1 }
 0x272   : > { %v384_v3 = vmul.f32 0.5, %v383_v2 }
 0x274   : > { %v385_v4 = vsub.f32 1.5, %v384_v3 }
 0x276   : > { %v386_v5 = vmul.f32 %v619_v0, %v385_v4 }
 0x278   : > { %v390_v7 = vsel %vm389_vm7, %v619_v0, %v386_v5 }
 0x279   : > { %v391_v9 = vmul.f32 %v390_v7, %v374_v58 }
 0x27b   : > { %v393_v10 = vmul.f32 %v614_v6, %v391_v9 }
 0x27d   : > { %v395_v11 = vadd.f32 %v615_v8, %v393_v10 }
 0x27f   : > { %396 = vst.msk [vmem:[%s262_s10] sm:$0xff] %vm273_vm0, %v395_v11 }
 0x280   : > { %767 = shalt.err (!%p764_p9)
}
 0x281   : > { %547 = dma.vmem_to_hbm [thread:$0]  (%p922_p13), %s411_s11, 128, %s413_s12, %s398_s22  }
 0x282 PF: > { %s424_s26 = sand.u32 1, %s802_s15   ;;  %p1022_p10 = scmp.ge.s32.totalorder %s814_s18, 2 }
 0x283   : > { %s425_s6 = scalar_lea.sflag [#allocation4], %s424_s26 }
 0x284   : > { %p564_p11 = pnand %p1022_p10, %p927_p4 }
 0x286   : > { %p565_p0 = pneg %p564_p11 }
 0x288   : > { %797 = dma.done.wait (%p565_p0), %s425_s6, 128  }
 0x289   : > { %799 = vsyncadd (%p565_p0), %s425_s6, 4294967168  ;;  %p19_p2 = scmp.ge.s32.totalorder %s902_s14, 4   ;;  %s1023_s15 = smov %s806_s16 }
 0x28a   : > { %s1024_s16 = smov %s810_s17  ;;  %s1025_s17 = smov %s914_s21 }
 0x28b   : > { %s1026_s18 = smov %s902_s14  ;;  %21 = sbr.rel (!%p19_p2) target bundleno = 7 (0x7), region = 93 }
 0x290   :  { %431 = vsyncpa [#allocation3], 1 }
 0x291   :  { %433 = vsyncpa [#allocation3 + $0x1], 1 }
 0x292   :  { %434 = vsyncpa [#allocation6], 1 }
 0x293   :  { %435 = vsyncpa [#allocation9], 1 }
 0x294   :  { %436 = vsyncpa [#allocation4], 1 }
 0x295   :  { %438 = vsyncpa [#allocation4 + $0x1], 1 }

</bundles_post_ra>
